<compile_context>
chip_gen: v5e
topology: v5e:2x2
jax: 0.10.0
libtpu: 0.0.40
codegen_flags: <defaults>
</compile_context>

<pallas_src>
import functools

import jax
import jax.numpy as jnp
from jax import lax
from jax.experimental import pallas as pl
from jax.experimental.pallas import tpu as pltpu

# Explicit scoped-VMEM budget: generous for these shapes, still inside v7x's
# 64 MiB/TC physical VMEM (and far below v5e/v6e's 128 MiB).
_VMEM_LIMIT = 48 * 1024 * 1024


def _round_up(n: int, m: int) -> int:
    return ((n + m - 1) // m) * m


# ---------------------------------------------------------------------------
# Generic row-tiled dense kernel:  Y = X @ W + b   (W, b resident in VMEM).
# Used for the hoisted input projection and the deferred output head — both
# run once over T*B rows, off the recurrence critical path.
# NOTE: single K block (K = d_input or H_pad); fine for RNN-cell sized layers.
# ---------------------------------------------------------------------------
def _dense_kernel(x_ref, w_ref, b_ref, o_ref):
    o_ref[...] = (jnp.dot(x_ref[...].astype(w_ref.dtype), w_ref[...],
                          preferred_element_type=jnp.float32)
                  + b_ref[...]).astype(o_ref.dtype)


def _dense(x, w, b, out_dtype=jnp.float32, row_block=256):
    """Y[M, N] = X[M, K] @ W[K, N] + b[1, N], tiled over rows."""
    m, k = x.shape
    n = w.shape[1]
    m_blk = min(row_block, _round_up(m, 8))
    m_pad = _round_up(m, m_blk)
    if m_pad != m:
        x = jnp.concatenate([x, jnp.zeros((m_pad - m, k), x.dtype)], axis=0)
    y = pl.pallas_call(
        _dense_kernel,
        out_shape=jax.ShapeDtypeStruct((m_pad, n), out_dtype),
        grid_spec=pltpu.PrefetchScalarGridSpec(
            num_scalar_prefetch=0,
            grid=(m_pad // m_blk,),
            in_specs=[
                pl.BlockSpec((m_blk, k), lambda i: (i, 0)),
                pl.BlockSpec((k, n), lambda i: (0, 0)),    # resident, DMA'd once
                pl.BlockSpec((1, n), lambda i: (0, 0)),    # resident, DMA'd once
            ],
            out_specs=pl.BlockSpec((m_blk, n), lambda i: (i, 0)),
        ),
        compiler_params=pltpu.CompilerParams(
            dimension_semantics=("parallel",),
            vmem_limit_bytes=_VMEM_LIMIT),
    )(x, w, b)
    return y[:m] if m_pad != m else y


# ---------------------------------------------------------------------------
# Recurrent kernel: only the serial dependency chain, Tc timesteps per grid
# step.  grid = (batch_blocks, time_chunks); time axis last ("arbitrary").
# ---------------------------------------------------------------------------
def _recurrence_kernel(xp_ref, h0_ref, w_hh_ref, h_seq_ref, h_scr):
    """Shapes (padded):
      xp_ref    [Tc, Bblk, H_pad]   precomputed x @ W_ih^T + (b_ih + b_hh)
      h0_ref    [Bblk, H_pad]       initial hidden (constant across chunks)
      w_hh_ref  [H_pad, H_pad]      W_hh^T, resident in VMEM for all chunks
      h_seq_ref [Tc, Bblk, H_pad]   hidden state h[t] for this chunk (output)
      h_scr     [Bblk, H_pad] f32   hidden carried across time chunks
    """
    c = pl.program_id(1)

    @pl.when(c == 0)
    def _():
        h_scr[...] = h0_ref[...].astype(jnp.float32)

    tc = xp_ref.shape[0]

    def step(t, h):
        # Single small matmul + add + tanh per step; nothing else.
        pre = xp_ref[t] + jnp.dot(h.astype(w_hh_ref.dtype), w_hh_ref[...],
                                  preferred_element_type=jnp.float32)
        h_new = jnp.tanh(pre)                                  # f32, EUP
        h_seq_ref[t] = h_new.astype(h_seq_ref.dtype)           # lane-dense store
        return h_new

    # Hidden stays in vregs inside the chunk; scratch written once per chunk.
    h_scr[...] = lax.fori_loop(0, tc, step, h_scr[...], unroll=True)


def _run_recurrence(x_proj, h0_p, w_hh_t, b_block, t_chunk):
    t_pad, b_pad, h_pad = x_proj.shape
    return pl.pallas_call(
        _recurrence_kernel,
        out_shape=jax.ShapeDtypeStruct((t_pad, b_pad, h_pad), jnp.float32),
        grid_spec=pltpu.PrefetchScalarGridSpec(
            num_scalar_prefetch=0,
            grid=(b_pad // b_block, t_pad // t_chunk),
            in_specs=[
                pl.BlockSpec((t_chunk, b_block, h_pad), lambda b, c: (c, b, 0)),
                pl.BlockSpec((b_block, h_pad), lambda b, c: (b, 0)),
                # Constant block for every grid point -> W_hh^T DMA'd once and
                # kept resident in VMEM for the whole sequence.
                pl.BlockSpec((h_pad, h_pad), lambda b, c: (0, 0)),
            ],
            out_specs=pl.BlockSpec((t_chunk, b_block, h_pad),
                                   lambda b, c: (c, b, 0)),
            scratch_shapes=[pltpu.VMEM((b_block, h_pad), jnp.float32)],
        ),
        compiler_params=pltpu.CompilerParams(
            # batch axis shards across TensorCores; time axis is the serial
            # recurrence (kept last, "arbitrary").
            dimension_semantics=("parallel", "arbitrary"),
            vmem_limit_bytes=_VMEM_LIMIT),
    )(x_proj, h0_p, w_hh_t)


# ---------------------------------------------------------------------------
# One-time parameter prep (transpose / pad / pre-sum biases) — off hot path.
# ---------------------------------------------------------------------------
def prepare_params(params, d_input, d_hidden, num_classes,
                   weights_dtype=jnp.float32,
                   recurrent_weights_dtype=jnp.float32):
    """`params` uses PyTorch conventions:
      w_ih [H, I], b_ih [H], w_hh [H, H], b_hh [H], w_out [C, H], b_out [C].
    weights_dtype applies to the hoisted (non-recurrent) matmul weights
    (W_ih, W_out) — set jnp.bfloat16 on v6e/v7x for MXU peak.  W_hh stays f32
    by default so recurrent rounding error does not compound over long T.
    """
    h_pad = _round_up(d_hidden, 128)
    c_pad = _round_up(num_classes, 128)

    # W_ih^T : [d_input, H_pad].  Input (K) dim intentionally NOT padded.
    w_ih_t = jnp.zeros((d_input, h_pad), weights_dtype)
    w_ih_t = w_ih_t.at[:, :d_hidden].set(params["w_ih"].T.astype(weights_dtype))

    # Pre-summed RNN bias (b_ih + b_hh); padded lanes stay exactly zero.
    b_h = jnp.zeros((1, h_pad), jnp.float32)
    b_h = b_h.at[0, :d_hidden].set(
        (params["b_ih"] + params["b_hh"]).astype(jnp.float32))

    w_hh_t = jnp.zeros((h_pad, h_pad), recurrent_weights_dtype)
    w_hh_t = w_hh_t.at[:d_hidden, :d_hidden].set(
        params["w_hh"].T.astype(recurrent_weights_dtype))

    w_out_t = jnp.zeros((h_pad, c_pad), weights_dtype)
    w_out_t = w_out_t.at[:d_hidden, :num_classes].set(
        params["w_out"].T.astype(weights_dtype))
    b_out = jnp.zeros((1, c_pad), jnp.float32)
    b_out = b_out.at[0, :num_classes].set(params["b_out"].astype(jnp.float32))

    return {
        "w_ih_t": w_ih_t, "b_h": b_h, "w_hh_t": w_hh_t,
        "w_out_t": w_out_t, "b_out": b_out,
        "dims": (d_input, d_hidden, num_classes, h_pad, c_pad),
    }


@functools.partial(jax.jit, static_argnames=("dims", "t_chunk"))
def _forward_impl(x_seq, hidden, w_ih_t, b_h, w_hh_t, w_out_t, b_out,
                  dims, t_chunk):
    d_input, d_hidden, num_classes, h_pad, c_pad = dims
    seq_len, batch, _ = x_seq.shape

    tc = max(1, min(t_chunk, seq_len))
    t_pad = _round_up(seq_len, tc)
    b_pad = _round_up(batch, 8)
    # Split the batch across v7x's two TensorCores when it is large enough to
    # still feed the MXU per block; otherwise keep a single block.
    if b_pad >= 256 and (b_pad // 2) % 8 == 0:
        b_block = b_pad // 2
    else:
        b_block = b_pad

    # Pad batch (and ragged tail timesteps) with zeros.  d_input lanes are not
    # padded — the projection kernel handles the narrow K directly, so the
    # streamed x bytes stay at their logical size.
    x_p = jnp.zeros((t_pad, b_pad, d_input), x_seq.dtype)
    x_p = x_p.at[:seq_len, :batch, :].set(x_seq)
    h0_p = jnp.zeros((b_pad, h_pad), jnp.float32)
    h0_p = h0_p.at[:batch, :d_hidden].set(hidden.astype(jnp.float32))

    # (1) Hoisted input projection: ONE matmul over all T*B rows.
    xp_flat = _dense(x_p.reshape(t_pad * b_pad, d_input), w_ih_t, b_h)
    x_proj = xp_flat.reshape(t_pad, b_pad, h_pad)

    # (2) The only serial kernel: h[t] = tanh(x_proj[t] + h[t-1] @ W_hh^T).
    h_seq = _run_recurrence(x_proj, h0_p, w_hh_t, b_block, tc)

    # (3) Deferred output head: ONE matmul over all T*B rows.
    out_flat = _dense(h_seq.reshape(t_pad * b_pad, h_pad), w_out_t, b_out)
    out = out_flat.reshape(t_pad, b_pad, c_pad)

    outs = out[:seq_len, :batch, :num_classes]
    h_final = h_seq[seq_len - 1, :batch, :d_hidden]   # hidden carried forward
    return outs, h_final


def rnn_cell_sequence(x_seq, hidden, prep, t_chunk=16):
    """Run RNN_cell.forward over a whole sequence.

    Args:
      x_seq:  [T, batch, d_input] float32
      hidden: [batch, d_hidden]   float32 initial hidden state
      prep:   output of prepare_params()
    Returns:
      (outs [T, batch, num_classes], h_final [batch, d_hidden])
    """
    return _forward_impl(x_seq, hidden, prep["w_ih_t"], prep["b_h"],
                         prep["w_hh_t"], prep["w_out_t"], prep["b_out"],
                         prep["dims"], t_chunk)


def rnn_cell_forward(x, hidden, prep):
    """Single-step API matching the PyTorch module's forward(x)."""
    # TODO(synk): for tight decode loops, keep x / hidden pre-padded on device
    # and reuse a persistent T=1-specialized call instead of this wrapper.
    outs, h_new = rnn_cell_sequence(x[None], hidden, prep, t_chunk=1)
    return outs[0], h_new


def init_params(key, d_input, d_hidden, num_classes):
    """Deterministic synthetic init (uniform, PyTorch weight shapes)."""
    ks = jax.random.split(key, 6)
    bound = 1.0 / jnp.sqrt(d_hidden)
    return {
        "w_ih": jax.random.uniform(ks[0], (d_hidden, d_input), jnp.float32,
                                   -bound, bound),
        "b_ih": jax.random.uniform(ks[1], (d_hidden,), jnp.float32,
                                   -bound, bound),
        "w_hh": jax.random.uniform(ks[2], (d_hidden, d_hidden), jnp.float32,
                                   -bound, bound),
        "b_hh": jax.random.uniform(ks[3], (d_hidden,), jnp.float32,
                                   -bound, bound),
        "w_out": jax.random.uniform(ks[4], (num_classes, d_hidden), jnp.float32,
                                    -bound, bound),
        "b_out": jax.random.uniform(ks[5], (num_classes,), jnp.float32,
                                    -bound, bound),
    }


if __name__ == "__main__":
    batch, d_input, d_hidden, num_classes, seq_len = 2, 16, 32, 10, 8

    key = jax.random.PRNGKey(0)
    k_params, k_x = jax.random.split(key)
    params = init_params(k_params, d_input, d_hidden, num_classes)

    # One-time param prep (transpose/pad/bias pre-sum) — off the hot path.
    # On v6e/v7x: weights_dtype=jnp.bfloat16 (keep recurrent W_hh in f32).
    prep = prepare_params(params, d_input, d_hidden, num_classes,
                          weights_dtype=jnp.float32)

    x_seq = jax.random.normal(k_x, (seq_len, batch, d_input), jnp.float32)
    hidden0 = jnp.zeros((batch, d_hidden), jnp.float32)   # self.hidden init

    outs, h_final = rnn_cell_sequence(x_seq, hidden0, prep)
    outs = jax.block_until_ready(outs)
    h_final = jax.block_until_ready(h_final)

    # Pure-JAX reference: unrolled per-step loop, exactly the PyTorch math.
    h_ref = hidden0
    outs_ref = []
    for t in range(seq_len):
        pre = (x_seq[t] @ params["w_ih"].T + params["b_ih"]
               + h_ref @ params["w_hh"].T + params["b_hh"])
        h_ref = jnp.tanh(pre)                       # hidden carried = RNNCell out
        outs_ref.append(h_ref @ params["w_out"].T + params["b_out"])
    outs_ref = jnp.stack(outs_ref)

    assert outs.shape == (seq_len, batch, num_classes)
    assert h_final.shape == (batch, d_hidden)
    assert jnp.allclose(outs, outs_ref, atol=1e-4, rtol=1e-4), "output mismatch"
    assert jnp.allclose(h_final, h_ref, atol=1e-4, rtol=1e-4), "hidden mismatch"

    # Single-step API sanity check (matches module.forward on the first step).
    out0, h1 = rnn_cell_forward(x_seq[0], hidden0, prep)
    out0 = jax.block_until_ready(out0)
    assert jnp.allclose(out0, outs_ref[0], atol=1e-4, rtol=1e-4)

    print("KERNEL_OK")
</pallas_src>

<mosaic_0001>
module attributes {stable_mosaic.version = 11 : i64} {
  func.func @_dense_kernel(%arg0: i32, %arg1: memref<64x16xf32, #tpu.memory_space<vmem>>, %arg2: memref<16x128xf32, #tpu.memory_space<vmem>>, %arg3: memref<1x128xf32, #tpu.memory_space<vmem>>, %arg4: memref<64x128xf32, #tpu.memory_space<vmem>>) attributes {dimension_semantics = [#tpu.dimension_semantics<parallel>], iteration_bounds = array<i64: 1>, scalar_prefetch = 0 : i64, scratch_operands = 0 : i64, tpu.core_type = #tpu.core_type<tc>, window_params = [{transform_indices = @transform_0, window_bounds = array<i64: 64, 16>}, {pipeline_mode = #tpu.pipeline_mode<synchronous>, transform_indices = @transform_1, window_bounds = array<i64: 16, 128>}, {pipeline_mode = #tpu.pipeline_mode<synchronous>, transform_indices = @transform_2, window_bounds = array<i64: 1, 128>}, {transform_indices = @transform_3, window_bounds = array<i64: 64, 128>}]} {
    %c0 = arith.constant 0 : index
    %c0_0 = arith.constant 0 : index
    %0 = vector.load %arg1[%c0, %c0_0] : memref<64x16xf32, #tpu.memory_space<vmem>>, vector<64x16xf32>
    %c0_1 = arith.constant 0 : index
    %c0_2 = arith.constant 0 : index
    %1 = vector.load %arg2[%c0_1, %c0_2] : memref<16x128xf32, #tpu.memory_space<vmem>>, vector<16x128xf32>
    %cst = arith.constant dense<0.000000e+00> : vector<64x128xf32>
    %2 = tpu.matmul %0, %1, %cst {dimension_numbers = #tpu.dot_dimension_numbers<[1], [0], [0], [1], [0, 0, 1, 1], [], []>} : vector<64x16xf32>, vector<16x128xf32>, vector<64x128xf32> -> vector<64x128xf32>
    %c0_3 = arith.constant 0 : index
    %c0_4 = arith.constant 0 : index
    %3 = vector.load %arg3[%c0_3, %c0_4] : memref<1x128xf32, #tpu.memory_space<vmem>>, vector<1x128xf32>
    %4 = vector.broadcast %3 : vector<1x128xf32> to vector<64x128xf32>
    %5 = arith.addf %2, %4 : vector<64x128xf32>
    %c0_5 = arith.constant 0 : index
    %c0_6 = arith.constant 0 : index
    %6 = vector.load %arg4[%c0_5, %c0_6] : memref<64x128xf32, #tpu.memory_space<vmem>>, vector<64x128xf32>
    tpu.vector_store %arg4[%c0_5, %c0_6], %5 {strides = array<i32>} : memref<64x128xf32, #tpu.memory_space<vmem>>, vector<64x128xf32>,
    return
  }
  func.func @transform_0(%arg0: i32) -> (i32, i32) {
    %c0_i32 = arith.constant 0 : i32
    %c0_i32_0 = arith.constant 0 : i32
    return %arg0, %c0_i32 : i32, i32
  }
  func.func @transform_1(%arg0: i32) -> (i32, i32) {
    %c0_i32 = arith.constant 0 : i32
    %c0_i32_0 = arith.constant 0 : i32
    %c0_i32_1 = arith.constant 0 : i32
    return %c0_i32, %c0_i32_0 : i32, i32
  }
  func.func @transform_2(%arg0: i32) -> (i32, i32) {
    %c0_i32 = arith.constant 0 : i32
    %c0_i32_0 = arith.constant 0 : i32
    %c0_i32_1 = arith.constant 0 : i32
    return %c0_i32, %c0_i32_0 : i32, i32
  }
  func.func @transform_3(%arg0: i32) -> (i32, i32) {
    %c0_i32 = arith.constant 0 : i32
    %c0_i32_0 = arith.constant 0 : i32
    return %arg0, %c0_i32 : i32, i32
  }
}

module attributes {stable_mosaic.version = 11 : i64} {
  func.func @_recurrence_kernel(%arg0: i32, %arg1: i32, %arg2: memref<8x8x128xf32, #tpu.memory_space<vmem>>, %arg3: memref<8x128xf32, #tpu.memory_space<vmem>>, %arg4: memref<128x128xf32, #tpu.memory_space<vmem>>, %arg5: memref<8x8x128xf32, #tpu.memory_space<vmem>>, %arg6: memref<8x128xf32, #tpu.memory_space<vmem>>) attributes {dimension_semantics = [#tpu.dimension_semantics<parallel>, #tpu.dimension_semantics<arbitrary>], iteration_bounds = array<i64: 1, 1>, scalar_prefetch = 0 : i64, scratch_operands = 1 : i64, tpu.core_type = #tpu.core_type<tc>, window_params = [{transform_indices = @transform_0, window_bounds = array<i64: 8, 8, 128>}, {transform_indices = @transform_1, window_bounds = array<i64: 8, 128>}, {pipeline_mode = #tpu.pipeline_mode<synchronous>, transform_indices = @transform_2, window_bounds = array<i64: 128, 128>}, {transform_indices = @transform_3, window_bounds = array<i64: 8, 8, 128>}]} {
    %c0_i32 = arith.constant 0 : i32
    %0 = arith.cmpi eq, %arg1, %c0_i32 : i32
    %1 = arith.extui %0 : i1 to i32
    %c0_i32_0 = arith.constant 0 : i32
    %2 = arith.cmpi ne, %1, %c0_i32_0 : i32
    scf.if %2 {
      %c0_60 = arith.constant 0 : index
      %c0_61 = arith.constant 0 : index
      %93 = vector.load %arg3[%c0_60, %c0_61] : memref<8x128xf32, #tpu.memory_space<vmem>>, vector<8x128xf32>
      %c0_62 = arith.constant 0 : index
      %c0_63 = arith.constant 0 : index
      %94 = vector.load %arg6[%c0_62, %c0_63] : memref<8x128xf32, #tpu.memory_space<vmem>>, vector<8x128xf32>
      tpu.vector_store %arg6[%c0_62, %c0_63], %93 {strides = array<i32>} : memref<8x128xf32, #tpu.memory_space<vmem>>, vector<8x128xf32>,
    } else {
    }
    %c0 = arith.constant 0 : index
    %c0_1 = arith.constant 0 : index
    %3 = vector.load %arg6[%c0, %c0_1] : memref<8x128xf32, #tpu.memory_space<vmem>>, vector<8x128xf32>
    %c0_i32_2 = arith.constant 0 : i32
    %4 = arith.index_cast %c0_i32_2 : i32 to index
    %c0_3 = arith.constant 0 : index
    %c0_4 = arith.constant 0 : index
    %5 = vector.load %arg2[%4, %c0_3, %c0_4] : memref<8x8x128xf32, #tpu.memory_space<vmem>>, vector<1x8x128xf32>
    %6 = vector.shape_cast %5 : vector<1x8x128xf32> to vector<8x128xf32>
    %c0_5 = arith.constant 0 : index
    %c0_6 = arith.constant 0 : index
    %7 = vector.load %arg4[%c0_5, %c0_6] : memref<128x128xf32, #tpu.memory_space<vmem>>, vector<128x128xf32>
    %cst = arith.constant dense<0.000000e+00> : vector<8x128xf32>
    %8 = tpu.matmul %3, %7, %cst {dimension_numbers = #tpu.dot_dimension_numbers<[1], [0], [0], [1], [0, 0, 1, 1], [], []>} : vector<8x128xf32>, vector<128x128xf32>, vector<8x128xf32> -> vector<8x128xf32>
    %9 = arith.addf %6, %8 : vector<8x128xf32>
    %10 = math.tanh %9 : vector<8x128xf32>
    %11 = arith.index_cast %c0_i32_2 : i32 to index
    %c0_7 = arith.constant 0 : index
    %c0_8 = arith.constant 0 : index
    %12 = vector.load %arg5[%11, %c0_7, %c0_8] : memref<8x8x128xf32, #tpu.memory_space<vmem>>, vector<1x8x128xf32>
    %13 = vector.shape_cast %12 : vector<1x8x128xf32> to vector<8x128xf32>
    %14 = vector.shape_cast %10 : vector<8x128xf32> to vector<1x8x128xf32>
    tpu.vector_store %arg5[%11, %c0_7, %c0_8], %14 {strides = array<i32>} : memref<8x8x128xf32, #tpu.memory_space<vmem>>, vector<1x8x128xf32>,
    %c1_i32 = arith.constant 1 : i32
    %15 = arith.index_cast %c1_i32 : i32 to index
    %c0_9 = arith.constant 0 : index
    %c0_10 = arith.constant 0 : index
    %16 = vector.load %arg2[%15, %c0_9, %c0_10] : memref<8x8x128xf32, #tpu.memory_space<vmem>>, vector<1x8x128xf32>
    %17 = vector.shape_cast %16 : vector<1x8x128xf32> to vector<8x128xf32>
    %c0_11 = arith.constant 0 : index
    %c0_12 = arith.constant 0 : index
    %18 = vector.load %arg4[%c0_11, %c0_12] : memref<128x128xf32, #tpu.memory_space<vmem>>, vector<128x128xf32>
    %cst_13 = arith.constant dense<0.000000e+00> : vector<8x128xf32>
    %19 = tpu.matmul %10, %18, %cst_13 {dimension_numbers = #tpu.dot_dimension_numbers<[1], [0], [0], [1], [0, 0, 1, 1], [], []>} : vector<8x128xf32>, vector<128x128xf32>, vector<8x128xf32> -> vector<8x128xf32>
    %20 = arith.addf %17, %19 : vector<8x128xf32>
    %21 = math.tanh %20 : vector<8x128xf32>
    %22 = arith.index_cast %c1_i32 : i32 to index
    %c0_14 = arith.constant 0 : index
    %c0_15 = arith.constant 0 : index
    %23 = vector.load %arg5[%22, %c0_14, %c0_15] : memref<8x8x128xf32, #tpu.memory_space<vmem>>, vector<1x8x128xf32>
    %24 = vector.shape_cast %23 : vector<1x8x128xf32> to vector<8x128xf32>
    %25 = vector.shape_cast %21 : vector<8x128xf32> to vector<1x8x128xf32>
    tpu.vector_store %arg5[%22, %c0_14, %c0_15], %25 {strides = array<i32>} : memref<8x8x128xf32, #tpu.memory_space<vmem>>, vector<1x8x128xf32>,
    %c2_i32 = arith.constant 2 : i32
    %26 = arith.index_cast %c2_i32 : i32 to index
    %c0_16 = arith.constant 0 : index
    %c0_17 = arith.constant 0 : index
    %27 = vector.load %arg2[%26, %c0_16, %c0_17] : memref<8x8x128xf32, #tpu.memory_space<vmem>>, vector<1x8x128xf32>
    %28 = vector.shape_cast %27 : vector<1x8x128xf32> to vector<8x128xf32>
    %c0_18 = arith.constant 0 : index
    %c0_19 = arith.constant 0 : index
    %29 = vector.load %arg4[%c0_18, %c0_19] : memref<128x128xf32, #tpu.memory_space<vmem>>, vector<128x128xf32>
    %cst_20 = arith.constant dense<0.000000e+00> : vector<8x128xf32>
    %30 = tpu.matmul %21, %29, %cst_20 {dimension_numbers = #tpu.dot_dimension_numbers<[1], [0], [0], [1], [0, 0, 1, 1], [], []>} : vector<8x128xf32>, vector<128x128xf32>, vector<8x128xf32> -> vector<8x128xf32>
    %31 = arith.addf %28, %30 : vector<8x128xf32>
    %32 = math.tanh %31 : vector<8x128xf32>
    %33 = arith.index_cast %c2_i32 : i32 to index
    %c0_21 = arith.constant 0 : index
    %c0_22 = arith.constant 0 : index
    %34 = vector.load %arg5[%33, %c0_21, %c0_22] : memref<8x8x128xf32, #tpu.memory_space<vmem>>, vector<1x8x128xf32>
    %35 = vector.shape_cast %34 : vector<1x8x128xf32> to vector<8x128xf32>
    %36 = vector.shape_cast %32 : vector<8x128xf32> to vector<1x8x128xf32>
    tpu.vector_store %arg5[%33, %c0_21, %c0_22], %36 {strides = array<i32>} : memref<8x8x128xf32, #tpu.memory_space<vmem>>, vector<1x8x128xf32>,
    %c3_i32 = arith.constant 3 : i32
    %37 = arith.index_cast %c3_i32 : i32 to index
    %c0_23 = arith.constant 0 : index
    %c0_24 = arith.constant 0 : index
    %38 = vector.load %arg2[%37, %c0_23, %c0_24] : memref<8x8x128xf32, #tpu.memory_space<vmem>>, vector<1x8x128xf32>
    %39 = vector.shape_cast %38 : vector<1x8x128xf32> to vector<8x128xf32>
    %c0_25 = arith.constant 0 : index
    %c0_26 = arith.constant 0 : index
    %40 = vector.load %arg4[%c0_25, %c0_26] : memref<128x128xf32, #tpu.memory_space<vmem>>, vector<128x128xf32>
    %cst_27 = arith.constant dense<0.000000e+00> : vector<8x128xf32>
    %41 = tpu.matmul %32, %40, %cst_27 {dimension_numbers = #tpu.dot_dimension_numbers<[1], [0], [0], [1], [0, 0, 1, 1], [], []>} : vector<8x128xf32>, vector<128x128xf32>, vector<8x128xf32> -> vector<8x128xf32>
    %42 = arith.addf %39, %41 : vector<8x128xf32>
    %43 = math.tanh %42 : vector<8x128xf32>
    %44 = arith.index_cast %c3_i32 : i32 to index
    %c0_28 = arith.constant 0 : index
    %c0_29 = arith.constant 0 : index
    %45 = vector.load %arg5[%44, %c0_28, %c0_29] : memref<8x8x128xf32, #tpu.memory_space<vmem>>, vector<1x8x128xf32>
    %46 = vector.shape_cast %45 : vector<1x8x128xf32> to vector<8x128xf32>
    %47 = vector.shape_cast %43 : vector<8x128xf32> to vector<1x8x128xf32>
    tpu.vector_store %arg5[%44, %c0_28, %c0_29], %47 {strides = array<i32>} : memref<8x8x128xf32, #tpu.memory_space<vmem>>, vector<1x8x128xf32>,
    %c4_i32 = arith.constant 4 : i32
    %48 = arith.index_cast %c4_i32 : i32 to index
    %c0_30 = arith.constant 0 : index
    %c0_31 = arith.constant 0 : index
    %49 = vector.load %arg2[%48, %c0_30, %c0_31] : memref<8x8x128xf32, #tpu.memory_space<vmem>>, vector<1x8x128xf32>
    %50 = vector.shape_cast %49 : vector<1x8x128xf32> to vector<8x128xf32>
    %c0_32 = arith.constant 0 : index
    %c0_33 = arith.constant 0 : index
    %51 = vector.load %arg4[%c0_32, %c0_33] : memref<128x128xf32, #tpu.memory_space<vmem>>, vector<128x128xf32>
    %cst_34 = arith.constant dense<0.000000e+00> : vector<8x128xf32>
    %52 = tpu.matmul %43, %51, %cst_34 {dimension_numbers = #tpu.dot_dimension_numbers<[1], [0], [0], [1], [0, 0, 1, 1], [], []>} : vector<8x128xf32>, vector<128x128xf32>, vector<8x128xf32> -> vector<8x128xf32>
    %53 = arith.addf %50, %52 : vector<8x128xf32>
    %54 = math.tanh %53 : vector<8x128xf32>
    %55 = arith.index_cast %c4_i32 : i32 to index
    %c0_35 = arith.constant 0 : index
    %c0_36 = arith.constant 0 : index
    %56 = vector.load %arg5[%55, %c0_35, %c0_36] : memref<8x8x128xf32, #tpu.memory_space<vmem>>, vector<1x8x128xf32>
    %57 = vector.shape_cast %56 : vector<1x8x128xf32> to vector<8x128xf32>
    %58 = vector.shape_cast %54 : vector<8x128xf32> to vector<1x8x128xf32>
    tpu.vector_store %arg5[%55, %c0_35, %c0_36], %58 {strides = array<i32>} : memref<8x8x128xf32, #tpu.memory_space<vmem>>, vector<1x8x128xf32>,
    %c5_i32 = arith.constant 5 : i32
    %59 = arith.index_cast %c5_i32 : i32 to index
    %c0_37 = arith.constant 0 : index
    %c0_38 = arith.constant 0 : index
    %60 = vector.load %arg2[%59, %c0_37, %c0_38] : memref<8x8x128xf32, #tpu.memory_space<vmem>>, vector<1x8x128xf32>
    %61 = vector.shape_cast %60 : vector<1x8x128xf32> to vector<8x128xf32>
    %c0_39 = arith.constant 0 : index
    %c0_40 = arith.constant 0 : index
    %62 = vector.load %arg4[%c0_39, %c0_40] : memref<128x128xf32, #tpu.memory_space<vmem>>, vector<128x128xf32>
    %cst_41 = arith.constant dense<0.000000e+00> : vector<8x128xf32>
    %63 = tpu.matmul %54, %62, %cst_41 {dimension_numbers = #tpu.dot_dimension_numbers<[1], [0], [0], [1], [0, 0, 1, 1], [], []>} : vector<8x128xf32>, vector<128x128xf32>, vector<8x128xf32> -> vector<8x128xf32>
    %64 = arith.addf %61, %63 : vector<8x128xf32>
    %65 = math.tanh %64 : vector<8x128xf32>
    %66 = arith.index_cast %c5_i32 : i32 to index
    %c0_42 = arith.constant 0 : index
    %c0_43 = arith.constant 0 : index
    %67 = vector.load %arg5[%66, %c0_42, %c0_43] : memref<8x8x128xf32, #tpu.memory_space<vmem>>, vector<1x8x128xf32>
    %68 = vector.shape_cast %67 : vector<1x8x128xf32> to vector<8x128xf32>
    %69 = vector.shape_cast %65 : vector<8x128xf32> to vector<1x8x128xf32>
    tpu.vector_store %arg5[%66, %c0_42, %c0_43], %69 {strides = array<i32>} : memref<8x8x128xf32, #tpu.memory_space<vmem>>, vector<1x8x128xf32>,
    %c6_i32 = arith.constant 6 : i32
    %70 = arith.index_cast %c6_i32 : i32 to index
    %c0_44 = arith.constant 0 : index
    %c0_45 = arith.constant 0 : index
    %71 = vector.load %arg2[%70, %c0_44, %c0_45] : memref<8x8x128xf32, #tpu.memory_space<vmem>>, vector<1x8x128xf32>
    %72 = vector.shape_cast %71 : vector<1x8x128xf32> to vector<8x128xf32>
    %c0_46 = arith.constant 0 : index
    %c0_47 = arith.constant 0 : index
    %73 = vector.load %arg4[%c0_46, %c0_47] : memref<128x128xf32, #tpu.memory_space<vmem>>, vector<128x128xf32>
    %cst_48 = arith.constant dense<0.000000e+00> : vector<8x128xf32>
    %74 = tpu.matmul %65, %73, %cst_48 {dimension_numbers = #tpu.dot_dimension_numbers<[1], [0], [0], [1], [0, 0, 1, 1], [], []>} : vector<8x128xf32>, vector<128x128xf32>, vector<8x128xf32> -> vector<8x128xf32>
    %75 = arith.addf %72, %74 : vector<8x128xf32>
    %76 = math.tanh %75 : vector<8x128xf32>
    %77 = arith.index_cast %c6_i32 : i32 to index
    %c0_49 = arith.constant 0 : index
    %c0_50 = arith.constant 0 : index
    %78 = vector.load %arg5[%77, %c0_49, %c0_50] : memref<8x8x128xf32, #tpu.memory_space<vmem>>, vector<1x8x128xf32>
    %79 = vector.shape_cast %78 : vector<1x8x128xf32> to vector<8x128xf32>
    %80 = vector.shape_cast %76 : vector<8x128xf32> to vector<1x8x128xf32>
    tpu.vector_store %arg5[%77, %c0_49, %c0_50], %80 {strides = array<i32>} : memref<8x8x128xf32, #tpu.memory_space<vmem>>, vector<1x8x128xf32>,
    %c7_i32 = arith.constant 7 : i32
    %81 = arith.index_cast %c7_i32 : i32 to index
    %c0_51 = arith.constant 0 : index
    %c0_52 = arith.constant 0 : index
    %82 = vector.load %arg2[%81, %c0_51, %c0_52] : memref<8x8x128xf32, #tpu.memory_space<vmem>>, vector<1x8x128xf32>
    %83 = vector.shape_cast %82 : vector<1x8x128xf32> to vector<8x128xf32>
    %c0_53 = arith.constant 0 : index
    %c0_54 = arith.constant 0 : index
    %84 = vector.load %arg4[%c0_53, %c0_54] : memref<128x128xf32, #tpu.memory_space<vmem>>, vector<128x128xf32>
    %cst_55 = arith.constant dense<0.000000e+00> : vector<8x128xf32>
    %85 = tpu.matmul %76, %84, %cst_55 {dimension_numbers = #tpu.dot_dimension_numbers<[1], [0], [0], [1], [0, 0, 1, 1], [], []>} : vector<8x128xf32>, vector<128x128xf32>, vector<8x128xf32> -> vector<8x128xf32>
    %86 = arith.addf %83, %85 : vector<8x128xf32>
    %87 = math.tanh %86 : vector<8x128xf32>
    %88 = arith.index_cast %c7_i32 : i32 to index
    %c0_56 = arith.constant 0 : index
    %c0_57 = arith.constant 0 : index
    %89 = vector.load %arg5[%88, %c0_56, %c0_57] : memref<8x8x128xf32, #tpu.memory_space<vmem>>, vector<1x8x128xf32>
    %90 = vector.shape_cast %89 : vector<1x8x128xf32> to vector<8x128xf32>
    %91 = vector.shape_cast %87 : vector<8x128xf32> to vector<1x8x128xf32>
    tpu.vector_store %arg5[%88, %c0_56, %c0_57], %91 {strides = array<i32>} : memref<8x8x128xf32, #tpu.memory_space<vmem>>, vector<1x8x128xf32>,
    %c8_i32 = arith.constant 8 : i32
    %c0_58 = arith.constant 0 : index
    %c0_59 = arith.constant 0 : index
    %92 = vector.load %arg6[%c0_58, %c0_59] : memref<8x128xf32, #tpu.memory_space<vmem>>, vector<8x128xf32>
    tpu.vector_store %arg6[%c0_58, %c0_59], %87 {strides = array<i32>} : memref<8x128xf32, #tpu.memory_space<vmem>>, vector<8x128xf32>,
    return
  }
  func.func @transform_0(%arg0: i32, %arg1: i32) -> (i32, i32, i32) {
    %c0_i32 = arith.constant 0 : i32
    %c0_i32_0 = arith.constant 0 : i32
    return %arg1, %arg0, %c0_i32 : i32, i32, i32
  }
  func.func @transform_1(%arg0: i32, %arg1: i32) -> (i32, i32) {
    %c0_i32 = arith.constant 0 : i32
    %c0_i32_0 = arith.constant 0 : i32
    return %arg0, %c0_i32 : i32, i32
  }
  func.func @transform_2(%arg0: i32, %arg1: i32) -> (i32, i32) {
    %c0_i32 = arith.constant 0 : i32
    %c0_i32_0 = arith.constant 0 : i32
    %c0_i32_1 = arith.constant 0 : i32
    return %c0_i32, %c0_i32_0 : i32, i32
  }
  func.func @transform_3(%arg0: i32, %arg1: i32) -> (i32, i32, i32) {
    %c0_i32 = arith.constant 0 : i32
    %c0_i32_0 = arith.constant 0 : i32
    return %arg1, %arg0, %c0_i32 : i32, i32, i32
  }
}

module attributes {stable_mosaic.version = 11 : i64} {
  func.func @_dense_kernel(%arg0: i32, %arg1: memref<64x128xf32, #tpu.memory_space<vmem>>, %arg2: memref<128x128xf32, #tpu.memory_space<vmem>>, %arg3: memref<1x128xf32, #tpu.memory_space<vmem>>, %arg4: memref<64x128xf32, #tpu.memory_space<vmem>>) attributes {dimension_semantics = [#tpu.dimension_semantics<parallel>], iteration_bounds = array<i64: 1>, scalar_prefetch = 0 : i64, scratch_operands = 0 : i64, tpu.core_type = #tpu.core_type<tc>, window_params = [{transform_indices = @transform_0, window_bounds = array<i64: 64, 128>}, {pipeline_mode = #tpu.pipeline_mode<synchronous>, transform_indices = @transform_1, window_bounds = array<i64: 128, 128>}, {pipeline_mode = #tpu.pipeline_mode<synchronous>, transform_indices = @transform_2, window_bounds = array<i64: 1, 128>}, {transform_indices = @transform_3, window_bounds = array<i64: 64, 128>}]} {
    %c0 = arith.constant 0 : index
    %c0_0 = arith.constant 0 : index
    %0 = vector.load %arg1[%c0, %c0_0] : memref<64x128xf32, #tpu.memory_space<vmem>>, vector<64x128xf32>
    %c0_1 = arith.constant 0 : index
    %c0_2 = arith.constant 0 : index
    %1 = vector.load %arg2[%c0_1, %c0_2] : memref<128x128xf32, #tpu.memory_space<vmem>>, vector<128x128xf32>
    %cst = arith.constant dense<0.000000e+00> : vector<64x128xf32>
    %2 = tpu.matmul %0, %1, %cst {dimension_numbers = #tpu.dot_dimension_numbers<[1], [0], [0], [1], [0, 0, 1, 1], [], []>} : vector<64x128xf32>, vector<128x128xf32>, vector<64x128xf32> -> vector<64x128xf32>
    %c0_3 = arith.constant 0 : index
    %c0_4 = arith.constant 0 : index
    %3 = vector.load %arg3[%c0_3, %c0_4] : memref<1x128xf32, #tpu.memory_space<vmem>>, vector<1x128xf32>
    %4 = vector.broadcast %3 : vector<1x128xf32> to vector<64x128xf32>
    %5 = arith.addf %2, %4 : vector<64x128xf32>
    %c0_5 = arith.constant 0 : index
    %c0_6 = arith.constant 0 : index
    %6 = vector.load %arg4[%c0_5, %c0_6] : memref<64x128xf32, #tpu.memory_space<vmem>>, vector<64x128xf32>
    tpu.vector_store %arg4[%c0_5, %c0_6], %5 {strides = array<i32>} : memref<64x128xf32, #tpu.memory_space<vmem>>, vector<64x128xf32>,
    return
  }
  func.func @transform_0(%arg0: i32) -> (i32, i32) {
    %c0_i32 = arith.constant 0 : i32
    %c0_i32_0 = arith.constant 0 : i32
    return %arg0, %c0_i32 : i32, i32
  }
  func.func @transform_1(%arg0: i32) -> (i32, i32) {
    %c0_i32 = arith.constant 0 : i32
    %c0_i32_0 = arith.constant 0 : i32
    %c0_i32_1 = arith.constant 0 : i32
    return %c0_i32, %c0_i32_0 : i32, i32
  }
  func.func @transform_2(%arg0: i32) -> (i32, i32) {
    %c0_i32 = arith.constant 0 : i32
    %c0_i32_0 = arith.constant 0 : i32
    %c0_i32_1 = arith.constant 0 : i32
    return %c0_i32, %c0_i32_0 : i32, i32
  }
  func.func @transform_3(%arg0: i32) -> (i32, i32) {
    %c0_i32 = arith.constant 0 : i32
    %c0_i32_0 = arith.constant 0 : i32
    return %arg0, %c0_i32 : i32, i32
  }
}

</mosaic_0001>

<bundles_post_ra>
// kernel: _forward_impl.3
= control target key start
LH: loop header
LB: loop body
LE: loop exit
PB: predicated region body
PF: predicated region fallthrough
CT: control target
= control target key end

     0   :  { %vm28_vm0 = vcmask 130048   ;;  %s206_s1 = inlined_call_operand.vmem [shape: f32[16,128], index: 1, kind: input, shape index: {}]   ;;  %s207_s0 = inlined_call_operand.vmem [shape: f32[64,16], index: 0, kind: input, shape index: {}]   ;;  %s208_s2 = inlined_call_operand.vmem [shape: f32[1,128], index: 2, kind: input, shape index: {}]   ;;  %s209_s3 = inlined_call_operand.vmem [shape: f32[64,128], index: 3, kind: output, shape index: {}]  }
   0x1   :  { %v23_v0 = vld [vmem:[%s206_s1 + $0x8] sm:$0xff]  ;;  %v22_v1 = vld [vmem:[%s206_s1] sm:$0xff]  ;;  %v20_v3 = vld [vmem:[%s207_s0 + $0x30] sm:$0xff] }
   0x2   :  { %115 = vmatpush.msra.mxu2 %v23_v0  ;;  %116 = vmatpush.msra.mxu3 %v23_v0  ;;  %v18_v2 = vld [vmem:[%s207_s0 + $0x20] sm:$0xff]  ;;  %v16_v5 = vld [vmem:[%s207_s0 + $0x10] sm:$0xff]  ;;  %v19_v6 = vld [vmem:[%s207_s0 + $0x28] sm:$0xff] }
   0x3   :  { %67 = vmatpush.msra.mxu0 %v23_v0  ;;  %114 = vmatpush.msra.mxu1 %v23_v0  ;;  %v14_v4 = vld [vmem:[%s207_s0] sm:$0xff]  ;;  %v21_v7 = vld [vmem:[%s207_s0 + $0x38] sm:$0xff]  ;;  %v15_v8 = vld [vmem:[%s207_s0 + $0x8] sm:$0xff] }
   0x4   :  { %118 = vmatpush.msra.mxu2 %v22_v1  ;;  %119 = vmatpush.msra.mxu3 %v22_v1  ;;  %v17_v9 = vld [vmem:[%s207_s0 + $0x18] sm:$0xff]  ;;  %v120_v10 = vld [vmem:[%s208_s2] ss:$0 sm:$0xff] }
   0x5   :  { %110 = vmatmul.msk.f32.vlgmr.msra.gmra.mxu2 %vm28_vm0, %v18_v2  ;;  %112 = vmatmul.msk.f32.vlgmr.msra.gmra.mxu3 %vm28_vm0, %v20_v3 }
   0x6   :  { %68 = vmatpush.msra.mxu0 %v22_v1  ;;  %117 = vmatpush.msra.mxu1 %v22_v1 }
   0x7   :  { %106 = vmatmul.msk.f32.vlgmr.msra.gmra.mxu0 %vm28_vm0, %v14_v4  ;;  %108 = vmatmul.msk.f32.vlgmr.msra.gmra.mxu1 %vm28_vm0, %v16_v5 }
   0xd   :  { %111 = vmatmul.msk.f32.gmra.mxu2 %vm28_vm0, %v19_v6  ;;  %113 = vmatmul.msk.f32.gmra.mxu3 %vm28_vm0, %v21_v7 }
   0xf   :  { %107 = vmatmul.msk.f32.gmra.mxu0 %vm28_vm0, %v15_v8  ;;  %109 = vmatmul.msk.f32.gmra.mxu1 %vm28_vm0, %v17_v9 }
  0x84   :  { %v70_v11 = vpop.f32.mrf.mxu0  ;;  %v76_v12 = vpop.f32.mrf.mxu1 }
  0x85   :  { %v71_v13 = vadd.f32 %v120_v10, %v70_v11  ;;  %v77_v14 = vadd.f32 %v120_v10, %v76_v12 }
  0x87   :  { %94 = vst [vmem:[%s209_s3] sm:$0xff] %v71_v13 }
  0x88   :  { %96 = vst [vmem:[%s209_s3 + $0x10] sm:$0xff] %v77_v14  ;;  %v82_v15 = vpop.f32.mrf.mxu2  ;;  %v88_v16 = vpop.f32.mrf.mxu3 }
  0x89   :  { %v83_v17 = vadd.f32 %v120_v10, %v82_v15  ;;  %v89_v18 = vadd.f32 %v120_v10, %v88_v16 }
  0x8b   :  { %98 = vst [vmem:[%s209_s3 + $0x20] sm:$0xff] %v83_v17 }
  0x8c   :  { %100 = vst [vmem:[%s209_s3 + $0x30] sm:$0xff] %v89_v18  ;;  %v73_v19 = vpop.f32.mrf.mxu0  ;;  %v79_v20 = vpop.f32.mrf.mxu1 }
  0x8d   :  { %v74_v21 = vadd.f32 %v120_v10, %v73_v19  ;;  %v80_v22 = vadd.f32 %v120_v10, %v79_v20 }
  0x8f   :  { %95 = vst [vmem:[%s209_s3 + $0x8] sm:$0xff] %v74_v21 }
  0x90   :  { %97 = vst [vmem:[%s209_s3 + $0x18] sm:$0xff] %v80_v22  ;;  %v85_v23 = vpop.f32.mrf.mxu2  ;;  %v91_v24 = vpop.f32.mrf.mxu3 }
  0x91   :  { %v86_v25 = vadd.f32 %v120_v10, %v85_v23  ;;  %v92_v26 = vadd.f32 %v120_v10, %v91_v24 }
  0x93   :  { %99 = vst [vmem:[%s209_s3 + $0x28] sm:$0xff] %v86_v25 }
  0x94   :  { %101 = vst [vmem:[%s209_s3 + $0x38] sm:$0xff] %v92_v26 }

// kernel: _forward_impl.5
= control target key start
LH: loop header
LB: loop body
LE: loop exit
PB: predicated region body
PF: predicated region fallthrough
CT: control target
= control target key end

     0   :  { %8 = vsyncpa [#allocation3], 0  ;;  %s190_s15 = smov [#allocation2]   ;;  %s191_s17 = smov 128   ;;  %s267_s0 = inlined_call_operand.vmem [shape: f32[64,128], index: 0, kind: input, shape index: {}]   ;;  %s268_s1 = inlined_call_operand.hbm [shape: f32[128,128], index: 1, kind: input, shape index: {}]   ;;  %s269_s2 = inlined_call_operand.vmem [shape: f32[1,128], index: 2, kind: input, shape index: {}]   ;;  %s270_s3 = inlined_call_operand.vmem [shape: f32[64,128], index: 3, kind: output, shape index: {}]  }
   0x1   :  { %s15_s14 = sshll.u32 %s268_s1, 4  ;;  %s17_s16 = sshll.u32 %s190_s15, 4  ;;  %s16_s14 = int_to_ptr.hbm [resolvable:$true] %s15_s14  ;;  %s18_s16 = int_to_ptr.vmem [resolvable:$true] %s17_s16 }
   0x2   :  { %s192_s18 = smov 8  }
   0x3   :  { %23 = dma.hbm_to_vmem [thread:$0]  %s16_s14, 2048, %s18_s16, [#allocation3], %s191_s17, %s191_s17, %s192_s18  }
   0x4   :  { %188 = dma.done.wait [#allocation3], 2048  }
   0x5   :  { %189 = vsyncadd [#allocation3], 4294965248  ;;  %v53_v0 = vld [vmem:[#allocation2 + $0x78] sm:$0xff]  ;;  %v52_v1 = vld [vmem:[#allocation2 + $0x70] sm:$0xff] }
   0x6   :  { %113 = vmatpush.msra.mxu2 %v53_v0  ;;  %114 = vmatpush.msra.mxu3 %v53_v0  ;;  %v51_v2 = vld [vmem:[#allocation2 + $0x68] sm:$0xff]  ;;  %v50_v3 = vld [vmem:[#allocation2 + $0x60] sm:$0xff]  ;;  %v49_v4 = vld [vmem:[#allocation2 + $0x58] sm:$0xff] }
   0x7   :  { %58 = vmatpush.msra.mxu0 %v53_v0  ;;  %112 = vmatpush.msra.mxu1 %v53_v0  ;;  %v48_v5 = vld [vmem:[#allocation2 + $0x50] sm:$0xff]  ;;  %v47_v6 = vld [vmem:[#allocation2 + $0x48] sm:$0xff]  ;;  %v46_v7 = vld [vmem:[#allocation2 + $0x40] sm:$0xff] }
   0x8   :  { %116 = vmatpush.msra.mxu2 %v52_v1  ;;  %117 = vmatpush.msra.mxu3 %v52_v1  ;;  %v45_v8 = vld [vmem:[#allocation2 + $0x38] sm:$0xff]  ;;  %v44_v9 = vld [vmem:[#allocation2 + $0x30] sm:$0xff]  ;;  %v43_v10 = vld [vmem:[#allocation2 + $0x28] sm:$0xff] }
   0x9   :  { %59 = vmatpush.msra.mxu0 %v52_v1  ;;  %115 = vmatpush.msra.mxu1 %v52_v1  ;;  %v42_v11 = vld [vmem:[#allocation2 + $0x20] sm:$0xff]  ;;  %v41_v12 = vld [vmem:[#allocation2 + $0x18] sm:$0xff]  ;;  %v40_v13 = vld [vmem:[#allocation2 + $0x10] sm:$0xff] }
   0xa   :  { %119 = vmatpush.msra.mxu2 %v51_v2  ;;  %120 = vmatpush.msra.mxu3 %v51_v2  ;;  %v39_v14 = vld [vmem:[#allocation2 + $0x8] sm:$0xff]  ;;  %v38_v15 = vld [vmem:[#allocation2] sm:$0xff]  ;;  %v36_v17 = vld [vmem:[%s267_s0 + $0x30] sm:$0xff] }
   0xb   :  { %60 = vmatpush.msra.mxu0 %v51_v2  ;;  %118 = vmatpush.msra.mxu1 %v51_v2  ;;  %v34_v16 = vld [vmem:[%s267_s0 + $0x20] sm:$0xff]  ;;  %v32_v19 = vld [vmem:[%s267_s0 + $0x10] sm:$0xff]  ;;  %v35_v20 = vld [vmem:[%s267_s0 + $0x28] sm:$0xff] }
   0xc   :  { %122 = vmatpush.msra.mxu2 %v50_v3  ;;  %123 = vmatpush.msra.mxu3 %v50_v3  ;;  %v30_v18 = vld [vmem:[%s267_s0] sm:$0xff]  ;;  %v37_v21 = vld [vmem:[%s267_s0 + $0x38] sm:$0xff]  ;;  %v31_v22 = vld [vmem:[%s267_s0 + $0x8] sm:$0xff] }
   0xd   :  { %61 = vmatpush.msra.mxu0 %v50_v3  ;;  %121 = vmatpush.msra.mxu1 %v50_v3  ;;  %v33_v23 = vld [vmem:[%s267_s0 + $0x18] sm:$0xff]  ;;  %v163_v24 = vld [vmem:[%s269_s2] ss:$0 sm:$0xff] }
   0xe   :  { %125 = vmatpush.msra.mxu2 %v49_v4  ;;  %126 = vmatpush.msra.mxu3 %v49_v4 }
   0xf   :  { %62 = vmatpush.msra.mxu0 %v49_v4  ;;  %124 = vmatpush.msra.mxu1 %v49_v4 }
  0x10   :  { %128 = vmatpush.msra.mxu2 %v48_v5  ;;  %129 = vmatpush.msra.mxu3 %v48_v5 }
  0x11   :  { %63 = vmatpush.msra.mxu0 %v48_v5  ;;  %127 = vmatpush.msra.mxu1 %v48_v5 }
  0x12   :  { %131 = vmatpush.msra.mxu2 %v47_v6  ;;  %132 = vmatpush.msra.mxu3 %v47_v6 }
  0x13   :  { %64 = vmatpush.msra.mxu0 %v47_v6  ;;  %130 = vmatpush.msra.mxu1 %v47_v6 }
  0x14   :  { %134 = vmatpush.msra.mxu2 %v46_v7  ;;  %135 = vmatpush.msra.mxu3 %v46_v7 }
  0x15   :  { %65 = vmatpush.msra.mxu0 %v46_v7  ;;  %133 = vmatpush.msra.mxu1 %v46_v7 }
  0x16   :  { %137 = vmatpush.msra.mxu2 %v45_v8  ;;  %138 = vmatpush.msra.mxu3 %v45_v8 }
  0x17   :  { %66 = vmatpush.msra.mxu0 %v45_v8  ;;  %136 = vmatpush.msra.mxu1 %v45_v8 }
  0x18   :  { %140 = vmatpush.msra.mxu2 %v44_v9  ;;  %141 = vmatpush.msra.mxu3 %v44_v9 }
  0x19   :  { %67 = vmatpush.msra.mxu0 %v44_v9  ;;  %139 = vmatpush.msra.mxu1 %v44_v9 }
  0x1a   :  { %143 = vmatpush.msra.mxu2 %v43_v10  ;;  %144 = vmatpush.msra.mxu3 %v43_v10 }
  0x1b   :  { %68 = vmatpush.msra.mxu0 %v43_v10  ;;  %142 = vmatpush.msra.mxu1 %v43_v10 }
  0x1c   :  { %146 = vmatpush.msra.mxu2 %v42_v11  ;;  %147 = vmatpush.msra.mxu3 %v42_v11 }
  0x1d   :  { %69 = vmatpush.msra.mxu0 %v42_v11  ;;  %145 = vmatpush.msra.mxu1 %v42_v11 }
  0x1e   :  { %149 = vmatpush.msra.mxu2 %v41_v12  ;;  %150 = vmatpush.msra.mxu3 %v41_v12 }
  0x1f   :  { %70 = vmatpush.msra.mxu0 %v41_v12  ;;  %148 = vmatpush.msra.mxu1 %v41_v12 }
  0x20   :  { %152 = vmatpush.msra.mxu2 %v40_v13  ;;  %153 = vmatpush.msra.mxu3 %v40_v13 }
  0x21   :  { %71 = vmatpush.msra.mxu0 %v40_v13  ;;  %151 = vmatpush.msra.mxu1 %v40_v13 }
  0x22   :  { %155 = vmatpush.msra.mxu2 %v39_v14  ;;  %156 = vmatpush.msra.mxu3 %v39_v14 }
  0x23   :  { %72 = vmatpush.msra.mxu0 %v39_v14  ;;  %154 = vmatpush.msra.mxu1 %v39_v14 }
  0x24   :  { %158 = vmatpush.msra.mxu2 %v38_v15  ;;  %159 = vmatpush.msra.mxu3 %v38_v15 }
  0x25   :  { %86 = vmatmul.f32.vlgmr.msra.gmra.mxu2 %v34_v16  ;;  %92 = vmatmul.f32.vlgmr.msra.gmra.mxu3 %v36_v17 }
  0x26   :  { %73 = vmatpush.msra.mxu0 %v38_v15  ;;  %157 = vmatpush.msra.mxu1 %v38_v15 }
  0x27   :  { %74 = vmatmul.f32.vlgmr.msra.gmra.mxu0 %v30_v18  ;;  %80 = vmatmul.f32.vlgmr.msra.gmra.mxu1 %v32_v19 }
  0x2d   :  { %89 = vmatmul.f32.gmra.mxu2 %v35_v20  ;;  %95 = vmatmul.f32.gmra.mxu3 %v37_v21 }
  0x2f   :  { %77 = vmatmul.f32.gmra.mxu0 %v31_v22  ;;  %83 = vmatmul.f32.gmra.mxu1 %v33_v23 }
  0xa4   :  { %v75_v25 = vpop.f32.mrf.mxu0  ;;  %v81_v26 = vpop.f32.mrf.mxu1 }
  0xa5   :  { %v76_v27 = vadd.f32 %v163_v24, %v75_v25  ;;  %v82_v28 = vadd.f32 %v163_v24, %v81_v26 }
  0xa7   :  { %99 = vst [vmem:[%s270_s3] sm:$0xff] %v76_v27 }
  0xa8   :  { %101 = vst [vmem:[%s270_s3 + $0x10] sm:$0xff] %v82_v28  ;;  %v87_v29 = vpop.f32.mrf.mxu2  ;;  %v93_v30 = vpop.f32.mrf.mxu3 }
  0xa9   :  { %v88_v31 = vadd.f32 %v163_v24, %v87_v29  ;;  %v94_v32 = vadd.f32 %v163_v24, %v93_v30 }
  0xab   :  { %103 = vst [vmem:[%s270_s3 + $0x20] sm:$0xff] %v88_v31 }
  0xac   :  { %105 = vst [vmem:[%s270_s3 + $0x30] sm:$0xff] %v94_v32  ;;  %v78_v33 = vpop.f32.mrf.mxu0  ;;  %v84_v34 = vpop.f32.mrf.mxu1 }
  0xad   :  { %v79_v35 = vadd.f32 %v163_v24, %v78_v33  ;;  %v85_v36 = vadd.f32 %v163_v24, %v84_v34 }
  0xaf   :  { %100 = vst [vmem:[%s270_s3 + $0x8] sm:$0xff] %v79_v35 }
  0xb0   :  { %102 = vst [vmem:[%s270_s3 + $0x18] sm:$0xff] %v85_v36  ;;  %v90_v37 = vpop.f32.mrf.mxu2  ;;  %v96_v38 = vpop.f32.mrf.mxu3 }
  0xb1   :  { %v91_v39 = vadd.f32 %v163_v24, %v90_v37  ;;  %v97_v40 = vadd.f32 %v163_v24, %v96_v38 }
  0xb3   :  { %104 = vst [vmem:[%s270_s3 + $0x28] sm:$0xff] %v91_v39 }
  0xb4   :  { %106 = vst [vmem:[%s270_s3 + $0x38] sm:$0xff] %v97_v40 }
  0xb5   :  { %111 = vsyncpa [#allocation3], 1 }

// kernel: _forward_impl.4
= control target key start
LH: loop header
LB: loop body
LE: loop exit
PB: predicated region body
PF: predicated region fallthrough
CT: control target
= control target key end

     0   :  { %8 = vsyncpa [#allocation4], 0  ;;  %s436_s15 = smov [#allocation3]   ;;  %s437_s17 = smov 128   ;;  %s673_s0 = inlined_call_operand.vmem [shape: f32[8,8,128], index: 0, kind: input, shape index: {}]   ;;  %s674_s1 = inlined_call_operand.vmem [shape: f32[8,128], index: 1, kind: input, shape index: {}]   ;;  %s675_s2 = inlined_call_operand.hbm [shape: f32[128,128], index: 2, kind: input, shape index: {}]   ;;  %s676_s3 = inlined_call_operand.vmem [shape: f32[8,8,128], index: 3, kind: output, shape index: {}]  }
   0x1   :  { %s17_s14 = sshll.u32 %s675_s2, 4  ;;  %s19_s16 = sshll.u32 %s436_s15, 4  ;;  %s18_s14 = int_to_ptr.hbm [resolvable:$true] %s17_s14  ;;  %s20_s16 = int_to_ptr.vmem [resolvable:$true] %s19_s16 }
   0x2   :  { %s438_s18 = smov 8  }
   0x3   :  { %25 = dma.hbm_to_vmem [thread:$0]  %s18_s14, 2048, %s20_s16, [#allocation4], %s437_s17, %s437_s17, %s438_s18  }
   0x4   :  { %434 = dma.done.wait [#allocation4], 2048  }
   0x5   :  { %435 = vsyncadd [#allocation4], 4294965248  ;;  %v462_v0 = vld [vmem:[#allocation3 + $0x78] sm:$0xff]  ;;  %v464_v1 = vld [vmem:[#allocation3 + $0x70] sm:$0xff] }
   0x6   :  { %54 = vmatpush.msra.mxu0 %v462_v0  ;;  %95 = vmatpush.msra.mxu1 %v462_v0  ;;  %v468_v2 = vld [vmem:[#allocation3 + $0x68] sm:$0xff]  ;;  %v474_v3 = vld [vmem:[#allocation3 + $0x60] sm:$0xff]  ;;  %v480_v4 = vld [vmem:[#allocation3 + $0x58] sm:$0xff] }
   0x7   :  { %137 = vmatpush.msra.mxu2 %v462_v0  ;;  %179 = vmatpush.msra.mxu3 %v462_v0  ;;  %v486_v5 = vld [vmem:[#allocation3 + $0x50] sm:$0xff]  ;;  %v492_v6 = vld [vmem:[#allocation3 + $0x48] sm:$0xff]  ;;  %v498_v7 = vld [vmem:[#allocation3 + $0x40] sm:$0xff] }
   0x8   :  { %55 = vmatpush.msra.mxu0 %v464_v1  ;;  %96 = vmatpush.msra.mxu1 %v464_v1  ;;  %v504_v8 = vld [vmem:[#allocation3 + $0x38] sm:$0xff]  ;;  %v510_v9 = vld [vmem:[#allocation3 + $0x30] sm:$0xff]  ;;  %v516_v10 = vld [vmem:[#allocation3 + $0x28] sm:$0xff] }
   0x9   :  { %138 = vmatpush.msra.mxu2 %v464_v1  ;;  %180 = vmatpush.msra.mxu3 %v464_v1  ;;  %v522_v11 = vld [vmem:[#allocation3 + $0x20] sm:$0xff]  ;;  %v528_v12 = vld [vmem:[#allocation3 + $0x18] sm:$0xff]  ;;  %v534_v13 = vld [vmem:[#allocation3 + $0x10] sm:$0xff] }
   0xa   :  { %56 = vmatpush.msra.mxu0 %v468_v2  ;;  %97 = vmatpush.msra.mxu1 %v468_v2  ;;  %v540_v14 = vld [vmem:[#allocation3 + $0x8] sm:$0xff]  ;;  %v546_v15 = vld [vmem:[#allocation3] sm:$0xff]  ;;  %v379_v25 = vld [vmem:[%s673_s0 + $0x10] sm:$0xff] }
   0xb   :  { %139 = vmatpush.msra.mxu2 %v468_v2  ;;  %181 = vmatpush.msra.mxu3 %v468_v2  ;;  %v34_v16 = vld [vmem:[%s674_s1] sm:$0xff]  ;;  %v377_v21 = vld [vmem:[%s673_s0 + $0x8] sm:$0xff]  ;;  %v381_v29 = vld [vmem:[%s673_s0 + $0x18] sm:$0xff] }
   0xc   :  { %57 = vmatpush.msra.mxu0 %v474_v3  ;;  %98 = vmatpush.msra.mxu1 %v474_v3  ;;  %v37_v17 = vld [vmem:[%s673_s0] sm:$0xff]  ;;  %v385_v37 = vld [vmem:[%s673_s0 + $0x28] sm:$0xff]  ;;  %v387_v41 = vld [vmem:[%s673_s0 + $0x30] sm:$0xff] }
   0xd   :  { %140 = vmatpush.msra.mxu2 %v474_v3  ;;  %182 = vmatpush.msra.mxu3 %v474_v3  ;;  %v383_v33 = vld [vmem:[%s673_s0 + $0x20] sm:$0xff]  ;;  %v389_v45 = vld [vmem:[%s673_s0 + $0x38] sm:$0xff] }
   0xe   :  { %58 = vmatpush.msra.mxu0 %v480_v4  ;;  %99 = vmatpush.msra.mxu1 %v480_v4 }
   0xf   :  { %141 = vmatpush.msra.mxu2 %v480_v4  ;;  %183 = vmatpush.msra.mxu3 %v480_v4 }
  0x10   :  { %59 = vmatpush.msra.mxu0 %v486_v5  ;;  %100 = vmatpush.msra.mxu1 %v486_v5 }
  0x11   :  { %142 = vmatpush.msra.mxu2 %v486_v5  ;;  %184 = vmatpush.msra.mxu3 %v486_v5 }
  0x12   :  { %60 = vmatpush.msra.mxu0 %v492_v6  ;;  %101 = vmatpush.msra.mxu1 %v492_v6 }
  0x13   :  { %143 = vmatpush.msra.mxu2 %v492_v6  ;;  %185 = vmatpush.msra.mxu3 %v492_v6 }
  0x14   :  { %61 = vmatpush.msra.mxu0 %v498_v7  ;;  %102 = vmatpush.msra.mxu1 %v498_v7 }
  0x15   :  { %144 = vmatpush.msra.mxu2 %v498_v7  ;;  %186 = vmatpush.msra.mxu3 %v498_v7 }
  0x16   :  { %62 = vmatpush.msra.mxu0 %v504_v8  ;;  %103 = vmatpush.msra.mxu1 %v504_v8 }
  0x17   :  { %145 = vmatpush.msra.mxu2 %v504_v8  ;;  %187 = vmatpush.msra.mxu3 %v504_v8 }
  0x18   :  { %63 = vmatpush.msra.mxu0 %v510_v9  ;;  %104 = vmatpush.msra.mxu1 %v510_v9 }
  0x19   :  { %146 = vmatpush.msra.mxu2 %v510_v9  ;;  %188 = vmatpush.msra.mxu3 %v510_v9 }
  0x1a   :  { %64 = vmatpush.msra.mxu0 %v516_v10  ;;  %105 = vmatpush.msra.mxu1 %v516_v10 }
  0x1b   :  { %147 = vmatpush.msra.mxu2 %v516_v10  ;;  %189 = vmatpush.msra.mxu3 %v516_v10 }
  0x1c   :  { %65 = vmatpush.msra.mxu0 %v522_v11  ;;  %106 = vmatpush.msra.mxu1 %v522_v11 }
  0x1d   :  { %148 = vmatpush.msra.mxu2 %v522_v11  ;;  %190 = vmatpush.msra.mxu3 %v522_v11 }
  0x1e   :  { %66 = vmatpush.msra.mxu0 %v528_v12  ;;  %107 = vmatpush.msra.mxu1 %v528_v12 }
  0x1f   :  { %149 = vmatpush.msra.mxu2 %v528_v12  ;;  %191 = vmatpush.msra.mxu3 %v528_v12 }
  0x20   :  { %67 = vmatpush.msra.mxu0 %v534_v13  ;;  %108 = vmatpush.msra.mxu1 %v534_v13 }
  0x21   :  { %150 = vmatpush.msra.mxu2 %v534_v13  ;;  %192 = vmatpush.msra.mxu3 %v534_v13 }
  0x22   :  { %68 = vmatpush.msra.mxu0 %v540_v14  ;;  %109 = vmatpush.msra.mxu1 %v540_v14 }
  0x23   :  { %151 = vmatpush.msra.mxu2 %v540_v14  ;;  %193 = vmatpush.msra.mxu3 %v540_v14 }
  0x24   :  { %69 = vmatpush.msra.mxu0 %v546_v15  ;;  %110 = vmatpush.msra.mxu1 %v546_v15 }
  0x25   :  { %70 = vmatmul.f32.vlgmr.msra.gmra.mxu0 %v34_v16  ;;  %152 = vmatpush.msra.mxu2 %v546_v15 }
  0x26   :  { %194 = vmatpush.msra.mxu3 %v546_v15  ;;  %221 = vmatpush.msrb.mxu0 %v462_v0 }
  0x27   :  { %263 = vmatpush.msrb.mxu1 %v462_v0  ;;  %305 = vmatpush.msrb.mxu2 %v462_v0 }
  0x28   :  { %222 = vmatpush.msrb.mxu0 %v464_v1  ;;  %347 = vmatpush.msrb.mxu3 %v462_v0 }
  0x29   :  { %264 = vmatpush.msrb.mxu1 %v464_v1  ;;  %306 = vmatpush.msrb.mxu2 %v464_v1 }
  0x2a   :  { %223 = vmatpush.msrb.mxu0 %v468_v2  ;;  %348 = vmatpush.msrb.mxu3 %v464_v1 }
  0x2b   :  { %265 = vmatpush.msrb.mxu1 %v468_v2  ;;  %307 = vmatpush.msrb.mxu2 %v468_v2 }
  0x2c   :  { %224 = vmatpush.msrb.mxu0 %v474_v3  ;;  %349 = vmatpush.msrb.mxu3 %v468_v2 }
  0x2d   :  { %266 = vmatpush.msrb.mxu1 %v474_v3  ;;  %308 = vmatpush.msrb.mxu2 %v474_v3 }
  0x2e   :  { %225 = vmatpush.msrb.mxu0 %v480_v4  ;;  %350 = vmatpush.msrb.mxu3 %v474_v3 }
  0x2f   :  { %267 = vmatpush.msrb.mxu1 %v480_v4  ;;  %309 = vmatpush.msrb.mxu2 %v480_v4 }
  0x30   :  { %226 = vmatpush.msrb.mxu0 %v486_v5  ;;  %351 = vmatpush.msrb.mxu3 %v480_v4 }
  0x31   :  { %268 = vmatpush.msrb.mxu1 %v486_v5  ;;  %310 = vmatpush.msrb.mxu2 %v486_v5 }
  0x32   :  { %227 = vmatpush.msrb.mxu0 %v492_v6  ;;  %352 = vmatpush.msrb.mxu3 %v486_v5 }
  0x33   :  { %269 = vmatpush.msrb.mxu1 %v492_v6  ;;  %311 = vmatpush.msrb.mxu2 %v492_v6 }
  0x34   :  { %228 = vmatpush.msrb.mxu0 %v498_v7  ;;  %353 = vmatpush.msrb.mxu3 %v492_v6 }
  0x35   :  { %270 = vmatpush.msrb.mxu1 %v498_v7  ;;  %312 = vmatpush.msrb.mxu2 %v498_v7 }
  0x36   :  { %229 = vmatpush.msrb.mxu0 %v504_v8  ;;  %354 = vmatpush.msrb.mxu3 %v498_v7 }
  0x37   :  { %271 = vmatpush.msrb.mxu1 %v504_v8  ;;  %313 = vmatpush.msrb.mxu2 %v504_v8 }
  0x38   :  { %230 = vmatpush.msrb.mxu0 %v510_v9  ;;  %355 = vmatpush.msrb.mxu3 %v504_v8 }
  0x39   :  { %272 = vmatpush.msrb.mxu1 %v510_v9  ;;  %314 = vmatpush.msrb.mxu2 %v510_v9 }
  0x3a   :  { %231 = vmatpush.msrb.mxu0 %v516_v10  ;;  %356 = vmatpush.msrb.mxu3 %v510_v9 }
  0x3b   :  { %273 = vmatpush.msrb.mxu1 %v516_v10  ;;  %315 = vmatpush.msrb.mxu2 %v516_v10 }
  0x3c   :  { %232 = vmatpush.msrb.mxu0 %v522_v11  ;;  %357 = vmatpush.msrb.mxu3 %v516_v10 }
  0x3d   :  { %274 = vmatpush.msrb.mxu1 %v522_v11  ;;  %316 = vmatpush.msrb.mxu2 %v522_v11 }
  0x3e   :  { %233 = vmatpush.msrb.mxu0 %v528_v12  ;;  %358 = vmatpush.msrb.mxu3 %v522_v11 }
  0x3f   :  { %275 = vmatpush.msrb.mxu1 %v528_v12  ;;  %317 = vmatpush.msrb.mxu2 %v528_v12 }
  0x40   :  { %234 = vmatpush.msrb.mxu0 %v534_v13  ;;  %359 = vmatpush.msrb.mxu3 %v528_v12 }
  0x41   :  { %276 = vmatpush.msrb.mxu1 %v534_v13  ;;  %318 = vmatpush.msrb.mxu2 %v534_v13 }
  0x42   :  { %235 = vmatpush.msrb.mxu0 %v540_v14  ;;  %360 = vmatpush.msrb.mxu3 %v534_v13 }
  0x43   :  { %277 = vmatpush.msrb.mxu1 %v540_v14  ;;  %319 = vmatpush.msrb.mxu2 %v540_v14 }
  0x44   :  { %236 = vmatpush.msrb.mxu0 %v546_v15  ;;  %361 = vmatpush.msrb.mxu3 %v540_v14 }
  0x45   :  { %278 = vmatpush.msrb.mxu1 %v546_v15  ;;  %320 = vmatpush.msrb.mxu2 %v546_v15 }
  0x46   :  { %362 = vmatpush.msrb.mxu3 %v546_v15 }
  0xa2   :  { %v71_v18 = vpop.f32.mrf.mxu0 }
  0xa3   :  { %v74_v19 = vadd.f32 %v71_v18, %v37_v17 }
  0xa5   :  { %394 = vtanh.f32 %v74_v19 }
  0xab   :  { %v395_v20 = vpop.eup %394 }
  0xac   :  { %76 = vst [vmem:[%s676_s3] sm:$0xff] %v395_v20  ;;  %111 = vmatmul.f32.vlgmr.msra.gmra.mxu1 %v395_v20 }
 0x129   :  { %v112_v22 = vpop.f32.mrf.mxu1 }
 0x12a   :  { %v115_v23 = vadd.f32 %v377_v21, %v112_v22 }
 0x12c   :  { %396 = vtanh.f32 %v115_v23 }
 0x132   :  { %v397_v24 = vpop.eup %396 }
 0x133   :  { %378 = vst [vmem:[%s676_s3 + $0x8] sm:$0xff] %v397_v24  ;;  %153 = vmatmul.f32.vlgmr.msra.gmra.mxu2 %v397_v24 }
 0x1b6   :  { %v154_v26 = vpop.f32.mrf.mxu2 }
 0x1b7   :  { %v157_v27 = vadd.f32 %v379_v25, %v154_v26 }
 0x1b9   :  { %398 = vtanh.f32 %v157_v27 }
 0x1bf   :  { %v399_v28 = vpop.eup %398 }
 0x1c0   :  { %380 = vst [vmem:[%s676_s3 + $0x10] sm:$0xff] %v399_v28  ;;  %195 = vmatmul.f32.vlgmr.msra.gmra.mxu3 %v399_v28 }
 0x243   :  { %v196_v30 = vpop.f32.mrf.mxu3 }
 0x244   :  { %v199_v31 = vadd.f32 %v381_v29, %v196_v30 }
 0x246   :  { %400 = vtanh.f32 %v199_v31 }
 0x24c   :  { %v401_v32 = vpop.eup %400 }
 0x24d   :  { %382 = vst [vmem:[%s676_s3 + $0x18] sm:$0xff] %v401_v32  ;;  %237 = vmatmul.f32.vlgmr.msrb.gmra.mxu0 %v401_v32 }
 0x2ca   :  { %v238_v34 = vpop.f32.mrf.mxu0 }
 0x2cb   :  { %v241_v35 = vadd.f32 %v383_v33, %v238_v34 }
 0x2cd   :  { %402 = vtanh.f32 %v241_v35 }
 0x2d3   :  { %v403_v36 = vpop.eup %402 }
 0x2d4   :  { %384 = vst [vmem:[%s676_s3 + $0x20] sm:$0xff] %v403_v36  ;;  %279 = vmatmul.f32.vlgmr.msrb.gmra.mxu1 %v403_v36 }
 0x351   :  { %v280_v38 = vpop.f32.mrf.mxu1 }
 0x352   :  { %v283_v39 = vadd.f32 %v385_v37, %v280_v38 }
 0x354   :  { %404 = vtanh.f32 %v283_v39 }
 0x35a   :  { %v405_v40 = vpop.eup %404 }
 0x35b   :  { %386 = vst [vmem:[%s676_s3 + $0x28] sm:$0xff] %v405_v40  ;;  %321 = vmatmul.f32.vlgmr.msrb.gmra.mxu2 %v405_v40 }
 0x3de   :  { %v322_v42 = vpop.f32.mrf.mxu2 }
 0x3df   :  { %v325_v43 = vadd.f32 %v387_v41, %v322_v42 }
 0x3e1   :  { %406 = vtanh.f32 %v325_v43 }
 0x3e7   :  { %v407_v44 = vpop.eup %406 }
 0x3e8   :  { %388 = vst [vmem:[%s676_s3 + $0x30] sm:$0xff] %v407_v44  ;;  %363 = vmatmul.f32.vlgmr.msrb.gmra.mxu3 %v407_v44 }
 0x46b   :  { %v364_v46 = vpop.f32.mrf.mxu3 }
 0x46c   :  { %v367_v47 = vadd.f32 %v389_v45, %v364_v46 }
 0x46e   :  { %408 = vtanh.f32 %v367_v47 }
 0x474   :  { %v409_v48 = vpop.eup %408 }
 0x475   :  { %390 = vst [vmem:[%s676_s3 + $0x38] sm:$0xff] %v409_v48 }
 0x476   :  { %376 = vsyncpa [#allocation4], 1 }

</bundles_post_ra>
